<compile_context>
chip_gen: v7x
topology: tpu7x:2x2x1
jax: 0.10.0
libtpu: 0.0.40
codegen_flags: <defaults>
</compile_context>

<pallas_src>
import jax
import jax.numpy as jnp
from jax.experimental import pallas as pl
from jax.experimental.pallas import tpu as pltpu


def _round_up(n, m):
    return ((n + m - 1) // m) * m


def _pick_tk(k_pad, tk):
    """Largest multiple of 128 that divides k_pad and is <= tk (tk >= 128)."""
    tk = max(128, (tk // 128) * 128)
    if k_pad <= tk:
        return k_pad
    n = k_pad // 128
    best = 1
    for d in range(1, n + 1):
        if n % d == 0 and d * 128 <= tk:
            best = d
    return best * 128


def _epilogue(h, w2_ref, b2_ref, wc_ref, bc_ref, cox_ref, code_ref):
    """h: f32 [TM, H_pad] post-tanh activations of downsample1."""
    # encode_u: Linear + Tanh.  bf16 MXU operands, f32 accumulate.  Padded columns
    # of W2/b2 are zero -> tanh(0) = 0 in the padded code lanes.
    code = jnp.tanh(
        jnp.dot(h.astype(jnp.bfloat16), w2_ref[...],
                preferred_element_type=jnp.float32) + b2_ref[...])
    code_ref[...] = code.astype(code_ref.dtype)
    # cox head (out_features = 1): VPU multiply + XLU lane reduction instead of a
    # near-empty N=1 MXU matmul; padded wc lanes are zero so they contribute 0.
    cox = jnp.sum(code * wc_ref[...], axis=-1, keepdims=True) + bc_ref[0, 0]
    # Lane-dense store: broadcast the scalar-per-row across 128 lanes.
    cox_ref[...] = jnp.broadcast_to(cox, cox_ref.shape).astype(cox_ref.dtype)


def _cox_kernel_single(x_ref, w1_ref, b1_ref, w2_ref, b2_ref, wc_ref, bc_ref,
                       cox_ref, code_ref):
    # Single K step: no accumulator scratch, no pl.when bookkeeping.
    pre = jnp.dot(x_ref[...], w1_ref[...],
                  preferred_element_type=jnp.float32) + b1_ref[...]
    _epilogue(jnp.tanh(pre), w2_ref, b2_ref, wc_ref, bc_ref, cox_ref, code_ref)


def _cox_kernel_multi(x_ref, w1_ref, b1_ref, w2_ref, b2_ref, wc_ref, bc_ref,
                      cox_ref, code_ref, acc_ref):
    k = pl.program_id(1)

    @pl.when(k == 0)
    def _():
        # Fold the b1 bias into the accumulator init (saves an epilogue VPU add).
        acc_ref[...] = jnp.broadcast_to(b1_ref[...], acc_ref.shape)

    # downsample1 matmul, K-tiled: accumulate x_tile @ W1_tile in f32 (bf16 operands).
    acc_ref[...] += jnp.dot(x_ref[...], w1_ref[...],
                            preferred_element_type=jnp.float32)

    @pl.when(k == pl.num_programs(1) - 1)
    def _():
        _epilogue(jnp.tanh(acc_ref[...]), w2_ref, b2_ref, wc_ref, bc_ref,
                  cox_ref, code_ref)


def make_cox_forward(params, *, tm=128, tk=2048):
    """One-time parameter padding/casting; returns a jitted forward(x) -> (cox, code).

    tm: batch tile (use 256 on v6e/v7x for large batches); tk: max reduction tile.
    """
    w1, b1, w2, b2, wc, bc = (params["w1"], params["b1"], params["w2"],
                              params["b2"], params["wc"], params["bc"])
    K, H = w1.shape            # seq_length, sample_length
    C = w2.shape[1]            # code_dim

    H_pad = _round_up(H, 128)
    C_pad = _round_up(C, 128)
    K_pad = _round_up(K, 128)
    TK = _pick_tk(K_pad, tk)
    kt = K_pad // TK

    # --- one-time padding / bf16 casting (hoisted out of the per-call path). ---
    # Zero padding never changes the real outputs (padded contributions are 0).
    w1_p = jnp.zeros((K_pad, H_pad), jnp.bfloat16).at[:K, :H].set(
        w1.astype(jnp.bfloat16))
    b1_p = jnp.zeros((1, H_pad), jnp.float32).at[:, :H].set(
        jnp.asarray(b1, jnp.float32).reshape(1, H))
    w2_p = jnp.zeros((H_pad, C_pad), jnp.bfloat16).at[:H, :C].set(
        w2.astype(jnp.bfloat16))
    b2_p = jnp.zeros((1, C_pad), jnp.float32).at[:, :C].set(
        jnp.asarray(b2, jnp.float32).reshape(1, C))
    wc_p = jnp.zeros((1, C_pad), jnp.float32).at[:, :C].set(
        jnp.asarray(wc, jnp.float32).reshape(1, C))
    bc_p = jnp.asarray(bc, jnp.float32).reshape(1, 1)

    def forward(x):
        B = x.shape[0]
        # Pad batch only to the bf16 sublane pack (16), not a full 128-row MXU tile.
        b16 = _round_up(B, 16)
        if b16 <= tm:
            TM, B_pad = b16, b16
        else:
            TM, B_pad = tm, _round_up(B, tm)
        bt = B_pad // TM

        x_p = jnp.zeros((B_pad, K_pad), jnp.bfloat16).at[:B, :K].set(
            x.astype(jnp.bfloat16))

        out_shape = (
            jax.ShapeDtypeStruct((B_pad, 128), jnp.float32),    # cox, lane-dense
            jax.ShapeDtypeStruct((B_pad, C_pad), jnp.float32),  # code, lane-dense
        )

        if kt == 1:
            grid_spec = pltpu.PrefetchScalarGridSpec(
                num_scalar_prefetch=0,
                grid=(bt,),
                in_specs=[
                    pl.BlockSpec((TM, TK), lambda i: (i, 0)),        # x (full K)
                    pl.BlockSpec((TK, H_pad), lambda i: (0, 0)),     # W1
                    pl.BlockSpec((1, H_pad), lambda i: (0, 0)),      # b1
                    pl.BlockSpec((H_pad, C_pad), lambda i: (0, 0)),  # W2
                    pl.BlockSpec((1, C_pad), lambda i: (0, 0)),      # b2
                    pl.BlockSpec((1, C_pad), lambda i: (0, 0)),      # wc
                    pl.BlockSpec(memory_space=pltpu.MemorySpace.SMEM),  # bc scalar
                ],
                out_specs=(
                    pl.BlockSpec((TM, 128), lambda i: (i, 0)),
                    pl.BlockSpec((TM, C_pad), lambda i: (i, 0)),
                ),
            )
            kernel = _cox_kernel_single
            dims = ("parallel",)
        else:
            grid_spec = pltpu.PrefetchScalarGridSpec(
                num_scalar_prefetch=0,
                grid=(bt, kt),
                in_specs=[
                    pl.BlockSpec((TM, TK), lambda i, k: (i, k)),        # x
                    pl.BlockSpec((TK, H_pad), lambda i, k: (k, 0)),     # W1 (K-tiled)
                    pl.BlockSpec((1, H_pad), lambda i, k: (0, 0)),      # b1
                    pl.BlockSpec((H_pad, C_pad), lambda i, k: (0, 0)),  # W2 (resident)
                    pl.BlockSpec((1, C_pad), lambda i, k: (0, 0)),      # b2
                    pl.BlockSpec((1, C_pad), lambda i, k: (0, 0)),      # wc
                    pl.BlockSpec(memory_space=pltpu.MemorySpace.SMEM),  # bc scalar
                ],
                out_specs=(
                    pl.BlockSpec((TM, 128), lambda i, k: (i, 0)),
                    pl.BlockSpec((TM, C_pad), lambda i, k: (i, 0)),
                ),
                scratch_shapes=[pltpu.VMEM((TM, H_pad), jnp.float32)],
            )
            kernel = _cox_kernel_multi
            dims = ("parallel", "arbitrary")

        cox_pad, code_pad = pl.pallas_call(
            kernel,
            out_shape=out_shape,
            grid_spec=grid_spec,
            compiler_params=pltpu.CompilerParams(dimension_semantics=dims),
        )(x_p, w1_p, b1_p, w2_p, b2_p, wc_p, bc_p)

        return cox_pad[:B, :1], code_pad[:B, :C]

    return jax.jit(forward)


def init_params(key, seq_length, sample_length, code_dim):
    """Deterministic xavier-normal weights (matching nn.init.xavier_normal_),
    PyTorch-default uniform biases. Weights stored pre-transposed as [in, out]."""
    k1, k2, k3, k4, k5, k6 = jax.random.split(key, 6)

    def xavier(k, fan_in, fan_out):
        std = (2.0 / (fan_in + fan_out)) ** 0.5
        # PyTorch weight is [out, in]; store transposed [in, out].
        return (jax.random.normal(k, (fan_out, fan_in), jnp.float32) * std).T

    def bias(k, fan_in, fan_out):
        bound = 1.0 / (fan_in ** 0.5)
        return jax.random.uniform(k, (1, fan_out), jnp.float32, -bound, bound)

    return {
        "w1": xavier(k1, seq_length, sample_length),
        "b1": bias(k2, seq_length, sample_length),
        "w2": xavier(k3, sample_length, code_dim),
        "b2": bias(k4, sample_length, code_dim),
        "wc": xavier(k5, code_dim, 1),
        "bc": bias(k6, code_dim, 1),
    }


if __name__ == "__main__":
    seq_length, sample_length, code_dim = 256, 128, 32
    batch = 8

    key = jax.random.PRNGKey(0)
    kx, kp = jax.random.split(key)
    x = jax.random.normal(kx, (batch, seq_length), jnp.float32)
    params = init_params(kp, seq_length, sample_length, code_dim)

    # Default path: K_pad=256 <= tk -> single-K-step kernel (no accumulator).
    forward = make_cox_forward(params)
    cox_out, rna_code = forward(x)
    jax.block_until_ready((cox_out, rna_code))

    # Forced multi-K path (tk=128 -> 2 K steps, accumulator kernel), for coverage.
    forward_kt = make_cox_forward(params, tk=128)
    cox_kt, code_kt = forward_kt(x)
    jax.block_until_ready((cox_kt, code_kt))

    assert cox_out.shape == (batch, 1) and rna_code.shape == (batch, code_dim)
    assert cox_kt.shape == (batch, 1) and code_kt.shape == (batch, code_dim)

    # Reference 1: same mixed-precision path (bf16 MXU operands, f32 accumulate).
    xb = x.astype(jnp.bfloat16)
    w1b = params["w1"].astype(jnp.bfloat16)
    h_b = jnp.tanh(jnp.dot(xb, w1b, preferred_element_type=jnp.float32)
                   + params["b1"])
    code_b = jnp.tanh(jnp.dot(h_b.astype(jnp.bfloat16),
                              params["w2"].astype(jnp.bfloat16),
                              preferred_element_type=jnp.float32) + params["b2"])
    cox_b = code_b @ params["wc"] + params["bc"]
    assert jnp.allclose(rna_code, code_b, atol=3e-3)
    assert jnp.allclose(cox_out, cox_b, atol=3e-3)
    assert jnp.allclose(code_kt, code_b, atol=3e-3)
    assert jnp.allclose(cox_kt, cox_b, atol=3e-3)

    # Reference 2: full f32 reference (loose tol to absorb the bf16 matmuls).
    h_f = jnp.tanh(x @ params["w1"] + params["b1"])
    code_f = jnp.tanh(h_f @ params["w2"] + params["b2"])
    cox_f = code_f @ params["wc"] + params["bc"]
    assert jnp.allclose(rna_code, code_f, atol=5e-2)
    assert jnp.allclose(cox_out, cox_f, atol=5e-2)

    print("KERNEL_OK")
</pallas_src>

<mosaic_0001>
module attributes {stable_mosaic.version = 11 : i64} {
  func.func @_cox_kernel_single(%arg0: i32, %arg1: memref<16x256xbf16, #tpu.memory_space<vmem>>, %arg2: memref<256x128xbf16, #tpu.memory_space<vmem>>, %arg3: memref<1x128xf32, #tpu.memory_space<vmem>>, %arg4: memref<128x128xbf16, #tpu.memory_space<vmem>>, %arg5: memref<1x128xf32, #tpu.memory_space<vmem>>, %arg6: memref<1x128xf32, #tpu.memory_space<vmem>>, %arg7: memref<1x1xf32, #tpu.memory_space<smem>>, %arg8: memref<16x128xf32, #tpu.memory_space<vmem>>, %arg9: memref<16x128xf32, #tpu.memory_space<vmem>>) attributes {dimension_semantics = [#tpu.dimension_semantics<parallel>], iteration_bounds = array<i64: 1>, scalar_prefetch = 0 : i64, scratch_operands = 0 : i64, tpu.core_type = #tpu.core_type<tc>, window_params = [{transform_indices = @transform_0, window_bounds = array<i64: 16, 256>}, {pipeline_mode = #tpu.pipeline_mode<synchronous>, transform_indices = @transform_1, window_bounds = array<i64: 256, 128>}, {pipeline_mode = #tpu.pipeline_mode<synchronous>, transform_indices = @transform_2, window_bounds = array<i64: 1, 128>}, {pipeline_mode = #tpu.pipeline_mode<synchronous>, transform_indices = @transform_3, window_bounds = array<i64: 128, 128>}, {pipeline_mode = #tpu.pipeline_mode<synchronous>, transform_indices = @transform_4, window_bounds = array<i64: 1, 128>}, {pipeline_mode = #tpu.pipeline_mode<synchronous>, transform_indices = @transform_5, window_bounds = array<i64: 1, 128>}, {transform_indices = @transform_6, window_bounds = array<i64: 1, 1>}, {transform_indices = @transform_7, window_bounds = array<i64: 16, 128>}, {transform_indices = @transform_8, window_bounds = array<i64: 16, 128>}]} {
    %c0 = arith.constant 0 : index
    %c0_0 = arith.constant 0 : index
    %0 = vector.load %arg1[%c0, %c0_0] : memref<16x256xbf16, #tpu.memory_space<vmem>>, vector<16x256xbf16>
    %c0_1 = arith.constant 0 : index
    %c0_2 = arith.constant 0 : index
    %1 = vector.load %arg2[%c0_1, %c0_2] : memref<256x128xbf16, #tpu.memory_space<vmem>>, vector<256x128xbf16>
    %cst = arith.constant dense<0.000000e+00> : vector<16x128xf32>
    %2 = tpu.matmul %0, %1, %cst {dimension_numbers = #tpu.dot_dimension_numbers<[1], [0], [0], [1], [0, 0, 1, 1], [], []>} : vector<16x256xbf16>, vector<256x128xbf16>, vector<16x128xf32> -> vector<16x128xf32>
    %c0_3 = arith.constant 0 : index
    %c0_4 = arith.constant 0 : index
    %3 = vector.load %arg3[%c0_3, %c0_4] : memref<1x128xf32, #tpu.memory_space<vmem>>, vector<1x128xf32>
    %4 = vector.broadcast %3 : vector<1x128xf32> to vector<16x128xf32>
    %5 = arith.addf %2, %4 : vector<16x128xf32>
    %6 = math.tanh %5 : vector<16x128xf32>
    %7 = arith.truncf %6 : vector<16x128xf32> to vector<16x128xbf16>
    %c0_5 = arith.constant 0 : index
    %c0_6 = arith.constant 0 : index
    %8 = vector.load %arg4[%c0_5, %c0_6] : memref<128x128xbf16, #tpu.memory_space<vmem>>, vector<128x128xbf16>
    %cst_7 = arith.constant dense<0.000000e+00> : vector<16x128xf32>
    %9 = tpu.matmul %7, %8, %cst_7 {dimension_numbers = #tpu.dot_dimension_numbers<[1], [0], [0], [1], [0, 0, 1, 1], [], []>} : vector<16x128xbf16>, vector<128x128xbf16>, vector<16x128xf32> -> vector<16x128xf32>
    %c0_8 = arith.constant 0 : index
    %c0_9 = arith.constant 0 : index
    %10 = vector.load %arg5[%c0_8, %c0_9] : memref<1x128xf32, #tpu.memory_space<vmem>>, vector<1x128xf32>
    %11 = vector.broadcast %10 : vector<1x128xf32> to vector<16x128xf32>
    %12 = arith.addf %9, %11 : vector<16x128xf32>
    %13 = math.tanh %12 : vector<16x128xf32>
    %c0_10 = arith.constant 0 : index
    %c0_11 = arith.constant 0 : index
    %14 = vector.load %arg9[%c0_10, %c0_11] : memref<16x128xf32, #tpu.memory_space<vmem>>, vector<16x128xf32>
    tpu.vector_store %arg9[%c0_10, %c0_11], %13 {strides = array<i32>} : memref<16x128xf32, #tpu.memory_space<vmem>>, vector<16x128xf32>,
    %c0_12 = arith.constant 0 : index
    %c0_13 = arith.constant 0 : index
    %15 = vector.load %arg6[%c0_12, %c0_13] : memref<1x128xf32, #tpu.memory_space<vmem>>, vector<1x128xf32>
    %16 = vector.broadcast %15 : vector<1x128xf32> to vector<16x128xf32>
    %17 = arith.mulf %13, %16 : vector<16x128xf32>
    %cst_14 = arith.constant dense<0.000000e+00> : vector<16xf32>
    %18 = vector.multi_reduction <add>, %17, %cst_14 [1] : vector<16x128xf32> to vector<16xf32>
    %19 = vector.shape_cast %18 : vector<16xf32> to vector<16x1xf32>
    %c0_15 = arith.constant 0 : index
    %c0_16 = arith.constant 0 : index
    %20 = memref.load %arg7[%c0_15, %c0_16] : memref<1x1xf32, #tpu.memory_space<smem>>
    %21 = vector.broadcast %20 : f32 to vector<16x1xf32>
    %22 = arith.addf %19, %21 : vector<16x1xf32>
    %23 = vector.shape_cast %22 : vector<16x1xf32> to vector<16x1xf32>
    %24 = vector.broadcast %23 : vector<16x1xf32> to vector<16x128xf32>
    %c0_17 = arith.constant 0 : index
    %c0_18 = arith.constant 0 : index
    %25 = vector.load %arg8[%c0_17, %c0_18] : memref<16x128xf32, #tpu.memory_space<vmem>>, vector<16x128xf32>
    tpu.vector_store %arg8[%c0_17, %c0_18], %24 {strides = array<i32>} : memref<16x128xf32, #tpu.memory_space<vmem>>, vector<16x128xf32>,
    return
  }
  func.func @transform_0(%arg0: i32) -> (i32, i32) {
    %c0_i32 = arith.constant 0 : i32
    %c0_i32_0 = arith.constant 0 : i32
    return %arg0, %c0_i32 : i32, i32
  }
  func.func @transform_1(%arg0: i32) -> (i32, i32) {
    %c0_i32 = arith.constant 0 : i32
    %c0_i32_0 = arith.constant 0 : i32
    %c0_i32_1 = arith.constant 0 : i32
    return %c0_i32, %c0_i32_0 : i32, i32
  }
  func.func @transform_2(%arg0: i32) -> (i32, i32) {
    %c0_i32 = arith.constant 0 : i32
    %c0_i32_0 = arith.constant 0 : i32
    %c0_i32_1 = arith.constant 0 : i32
    return %c0_i32, %c0_i32_0 : i32, i32
  }
  func.func @transform_3(%arg0: i32) -> (i32, i32) {
    %c0_i32 = arith.constant 0 : i32
    %c0_i32_0 = arith.constant 0 : i32
    %c0_i32_1 = arith.constant 0 : i32
    return %c0_i32, %c0_i32_0 : i32, i32
  }
  func.func @transform_4(%arg0: i32) -> (i32, i32) {
    %c0_i32 = arith.constant 0 : i32
    %c0_i32_0 = arith.constant 0 : i32
    %c0_i32_1 = arith.constant 0 : i32
    return %c0_i32, %c0_i32_0 : i32, i32
  }
  func.func @transform_5(%arg0: i32) -> (i32, i32) {
    %c0_i32 = arith.constant 0 : i32
    %c0_i32_0 = arith.constant 0 : i32
    %c0_i32_1 = arith.constant 0 : i32
    return %c0_i32, %c0_i32_0 : i32, i32
  }
  func.func @transform_6(%arg0: i32) -> (i32, i32) {
    %c0_i32 = arith.constant 0 : i32
    %c0_i32_0 = arith.constant 0 : i32
    %c0_i32_1 = arith.constant 0 : i32
    return %c0_i32, %c0_i32_0 : i32, i32
  }
  func.func @transform_7(%arg0: i32) -> (i32, i32) {
    %c0_i32 = arith.constant 0 : i32
    %c0_i32_0 = arith.constant 0 : i32
    return %arg0, %c0_i32 : i32, i32
  }
  func.func @transform_8(%arg0: i32) -> (i32, i32) {
    %c0_i32 = arith.constant 0 : i32
    %c0_i32_0 = arith.constant 0 : i32
    return %arg0, %c0_i32 : i32, i32
  }
}

</mosaic_0001>

<bundles_post_ra>
// kernel: forward.1
= control target key start
LH: loop header
LB: loop body
LE: loop exit
PB: predicated region body
PF: predicated region fallthrough
CT: control target
= control target key end

     0   :  { %15 = vsyncpa [#allocation4], 0  ;;  %s523_s27 = smov [#allocation3]   ;;  %s639_s0 = inlined_call_operand.vmem [shape: bf16[16,256], index: 0, kind: input, shape index: {}]   ;;  %s640_s1 = inlined_call_operand.hbm [shape: bf16[256,128], index: 1, kind: input, shape index: {}]   ;;  %s641_s2 = inlined_call_operand.vmem [shape: f32[1,128], index: 2, kind: input, shape index: {}]   ;;  %s642_s3 = inlined_call_operand.vmem [shape: bf16[128,128], index: 3, kind: input, shape index: {}]   ;;  %s643_s4 = inlined_call_operand.vmem [shape: f32[1,128], index: 4, kind: input, shape index: {}]   ;;  %s644_s5 = inlined_call_operand.vmem [shape: f32[1,128], index: 5, kind: input, shape index: {}]   ;;  %s645_s6 = inlined_call_operand.<no memory space> [shape: f32[1,1], index: 6, kind: input, shape index: {}]   ;;  %s646_s7 = inlined_call_operand.vmem [shape: f32[16,128], index: 7, kind: output, shape index: {0}]   ;;  %s647_s8 = inlined_call_operand.vmem [shape: f32[16,128], index: 8, kind: output, shape index: {1}]  }
   0x1   :  { %s23_s28 = sshll.u32 %s523_s27, 4  ;;  %s499_s9 = scalar_lea.hbm %s640_s1, 2048  ;;  %s24_s28 = int_to_ptr.vmem [resolvable:$true] %s23_s28 }
   0x2   :  { %p500_p0 = scmp.ne.s32.totalorder %s640_s1, %s499_s9  ;;  %p503_p1 = scmp.lt.u32.totalorder %s499_s9, %s640_s1 }
   0x4   :  { %p505_p2 = pnand %p503_p1, %p500_p0 }
   0x6   :  { %508 = shalt.err (!%p505_p2)
}
   0x7   :  { %s509_s14 = scalar_lea.vmem %s24_s28, 2048  ;;  %p514_p4 = scmp.lt.s32.totalorder %s24_s28, %s24_s28 }
   0x8   :  { %p510_p3 = scmp.ne.s32.totalorder %s24_s28, %s509_s14  ;;  %p515_p5 = scmp.lt.s32.totalorder %s509_s14, %s509_s14 }
   0xa   :  { %p516_p6 = por %p515_p5, %p514_p4 }
   0xc   :  { %p517_p7 = pnand %p516_p6, %p510_p3 }
   0xe   :  { %520 = shalt.err (!%p517_p7)
}
   0xf   :  { %s524_s15 = smov 64   ;;  %s525_s16 = smov 4  }
  0x10   :  { %29 = dma.hbm_to_vmem [thread:$0]  %s640_s1, 2048, %s24_s28, [#allocation4], %s524_s15, %s524_s15, %s525_s16  }
  0x11   :  { %521 = dma.done.wait [#allocation4], 2048  }
  0x12   :  { %522 = vsyncadd [#allocation4], 4294965248  ;;  %v526_v0 = vmov 0.0   ;;  %v464_v1 = vld [vmem:[#allocation3 + $0x40] sm:$0xff]   ;;  %v466_v3 = vld [vmem:[#allocation3 + $0x48] sm:$0xff]   ;;  %vm527_vm0 = vmmov 0   ;;  %v365_v51 = vstv %s645_s6 }
  0x13   :  { %439 = vmatprep.subr.bf16.mxu1 %v526_v0  ;;  %v465_v2 = vld [vmem:[#allocation3] sm:$0xff]   ;;  %408 = vmatprep.subr.bf16.mxu0 %v464_v1  ;;  %v467_v4 = vld [vmem:[#allocation3 + $0x8] sm:$0xff]   ;;  %v468_v5 = vld [vmem:[#allocation3 + $0x50] sm:$0xff]  }
  0x14   :  { %409 = vmatpush3.bf16.msra.mxu0 %v465_v2  ;;  %v469_v6 = vld [vmem:[#allocation3 + $0x10] sm:$0xff]   ;;  %v470_v7 = vld [vmem:[#allocation3 + $0x58] sm:$0xff]   ;;  %v472_v9 = vld [vmem:[#allocation3 + $0x60] sm:$0xff]   ;;  %455 = vmatprep.mubr.msk.bf16.mxu1 %vm527_vm0, %v526_v0 }
  0x15   :  { %410 = vmatprep.subr.bf16.mxu0 %v466_v3  ;;  %v471_v8 = vld [vmem:[#allocation3 + $0x18] sm:$0xff]   ;;  %v473_v10 = vld [vmem:[#allocation3 + $0x20] sm:$0xff]   ;;  %v474_v11 = vld [vmem:[#allocation3 + $0x68] sm:$0xff]  }
  0x16   :  { %v475_v12 = vld [vmem:[#allocation3 + $0x28] sm:$0xff]   ;;  %v483_v14 = vld [vmem:[%s642_s3] sm:$0xff]   ;;  %v476_v15 = vld [vmem:[#allocation3 + $0x70] sm:$0xff]  }
  0x17   :  { %v482_v13 = vld [vmem:[%s639_s0 + $0x4] ss:$8 sps:$4 sm:$0xff]   ;;  %440 = vmatpush3.bf16.msra.mxu1 %v483_v14  ;;  %v477_v17 = vld [vmem:[#allocation3 + $0x30] sm:$0xff]   ;;  %v478_v18 = vld [vmem:[#allocation3 + $0x78] sm:$0xff]  }
  0x18   :  { %411 = vmatpush3.bf16.msra.mxu0 %v467_v4  ;;  %223 = vmatprep.mubr.bf16.mxu0 %v482_v13  ;;  %v484_v16 = vld [vmem:[%s642_s3 + $0x8] sm:$0xff]   ;;  %v485_v19 = vld [vmem:[%s642_s3 + $0x10] sm:$0xff]   ;;  %v479_v20 = vld [vmem:[#allocation3 + $0x38] sm:$0xff]  }
  0x19   :  { %412 = vmatprep.subr.bf16.mxu0 %v468_v5  ;;  %441 = vmatprep.subr.bf16.mxu1 %v526_v0  ;;  %v480_v21 = vld [vmem:[%s639_s0] ss:$8 sps:$4 sm:$0xff]   ;;  %v486_v22 = vld [vmem:[%s642_s3 + $0x18] sm:$0xff]   ;;  %v489_v25 = vld [vmem:[%s642_s3 + $0x30] sm:$0xff]  }
  0x1a   :  { %v487_v23 = vld [vmem:[%s642_s3 + $0x20] sm:$0xff]   ;;  %v488_v24 = vld [vmem:[%s642_s3 + $0x28] sm:$0xff]   ;;  %v490_v26 = vld [vmem:[%s642_s3 + $0x38] sm:$0xff]  }
  0x1b   :  { %442 = vmatpush3.bf16.msra.mxu1 %v484_v16  ;;  %v379_v28 = vld [vmem:[%s641_s2] ss:$0 sm:$0xff] }
  0x1c   :  { %413 = vmatpush3.bf16.msra.mxu0 %v469_v6  ;;  %443 = vmatprep.subr.bf16.mxu1 %v526_v0  ;;  %v398_v39 = vld [vmem:[%s643_s4] ss:$0 sm:$0xff] }
  0x1d   :  { %414 = vmatprep.subr.bf16.mxu0 %v470_v7  ;;  %v407_v46 = vld [vmem:[%s644_s5] ss:$0 sm:$0xff] }
  0x1f   :  { %444 = vmatpush3.bf16.msra.mxu1 %v485_v19 }
  0x20   :  { %415 = vmatpush3.bf16.msra.mxu0 %v471_v8  ;;  %445 = vmatprep.subr.bf16.mxu1 %v526_v0 }
  0x21   :  { %416 = vmatprep.subr.bf16.mxu0 %v472_v9 }
  0x23   :  { %446 = vmatpush3.bf16.msra.mxu1 %v486_v22 }
  0x24   :  { %417 = vmatpush3.bf16.msra.mxu0 %v473_v10  ;;  %447 = vmatprep.subr.bf16.mxu1 %v526_v0 }
  0x25   :  { %418 = vmatprep.subr.bf16.mxu0 %v474_v11 }
  0x27   :  { %448 = vmatpush3.bf16.msra.mxu1 %v487_v23 }
  0x28   :  { %419 = vmatpush3.bf16.msra.mxu0 %v475_v12  ;;  %449 = vmatprep.subr.bf16.mxu1 %v526_v0 }
  0x29   :  { %420 = vmatprep.subr.bf16.mxu0 %v476_v15 }
  0x2b   :  { %450 = vmatpush3.bf16.msra.mxu1 %v488_v24 }
  0x2c   :  { %421 = vmatpush3.bf16.msra.mxu0 %v477_v17  ;;  %451 = vmatprep.subr.bf16.mxu1 %v526_v0 }
  0x2d   :  { %422 = vmatprep.subr.bf16.mxu0 %v478_v18 }
  0x2f   :  { %452 = vmatpush3.bf16.msra.mxu1 %v489_v25 }
  0x30   :  { %423 = vmatpush3.bf16.msra.mxu0 %v479_v20  ;;  %453 = vmatprep.subr.bf16.mxu1 %v526_v0 }
  0x33   :  { %224 = vmatmul.mubr.bf16.vlgmr.msra.gmra.mrb[0].mxu0 %v480_v21  ;;  %454 = vmatpush3.bf16.msra.mxu1 %v490_v26 }
 0x106   :  { %v424_v27 = vpop.f32.mrb[0].mxu0 }
 0x107   :  { %v425_v29 = vpop.f32.mrb[1].mxu0 }
 0x108   :  { %v426_v30 = vadd.f32 %v425_v29, %v424_v27  ;;  %v427_v31 = vpop.f32.mrb[2].mxu0 }
 0x109   :  { %v428_v32 = vpop.f32.mrb[3].mxu0 }
 0x10a   :  { %v226_v33 = vadd.f32 %v426_v30, %v379_v28  ;;  %v429_v34 = vadd.f32 %v428_v32, %v427_v31 }
 0x10c   :  { %v229_v35 = vadd.f32 %v429_v34, %v379_v28  ;;  %491 = vtanh.f32 %v226_v33 }
 0x10e   :  { %493 = vtanh.f32 %v229_v35 }
 0x116   :  { %v492_v36 = vpop.eup %491 }
 0x118   :  { %v494_v37 = vpop.eup %493 }
 0x119   :  { %v234_v38 = vpack.c.bf16 %v494_v37, %v492_v36 }
 0x11b   :  { %456 = vmatmul.mubr.bf16.vlgmr.msra.gmra.mrb[0].mxu1 %v234_v38 }
 0x1ee   :  { %v340_v40 = vpop.f32.mrb[0].mxu1 }
 0x1ef   :  { %v341_v41 = vadd.f32 %v398_v39, %v340_v40  ;;  %v457_v42 = vpop.f32.mrb[1].mxu1 }
 0x1f0   :  { %v343_v43 = vpop.f32.mrb[2].mxu1 }
 0x1f1   :  { %495 = vtanh.f32 %v341_v41  ;;  %v344_v44 = vadd.f32 %v398_v39, %v343_v43  ;;  %v458_v45 = vpop.f32.mrb[3].mxu1 }
 0x1f3   :  { %497 = vtanh.f32 %v344_v44 }
 0x1fb   :  { %v496_v47 = vpop.eup %495 }
 0x1fc   :  { %349 = vst [vmem:[%s647_s8] sm:$0xff] %v496_v47  ;;  %v358_v48 = vmul.f32 %v496_v47, %v407_v46 }
 0x1fd   :  { %v498_v49 = vpop.eup %497 }
 0x1fe   :  { %350 = vst [vmem:[%s647_s8 + $0x8] sm:$0xff] %v498_v49  ;;  %360 = vadd.xlane.f32.xlu0 %v358_v48  ;;  %v359_v50 = vmul.f32 %v498_v49, %v407_v46 }
 0x202   :  { %362 = vadd.xlane.f32.xlu0 %v359_v50 }
 0x28b   :  { %v361_v52 = vpop.xlane.xlu0 %360 }
 0x28c   :  { %v366_v53 = vadd.f32 %v365_v51, %v361_v52 }
 0x28e   :  { %368 = vst [vmem:[%s646_s7] sm:$0xff] %v366_v53 }
 0x28f   :  { %v363_v54 = vpop.xlane.xlu0 %362 }
 0x290   :  { %v367_v55 = vadd.f32 %v365_v51, %v363_v54 }
 0x292   :  { %369 = vst [vmem:[%s646_s7 + $0x8] sm:$0xff] %v367_v55 }
 0x293   :  { %378 = vsyncpa [#allocation4], 1 }

</bundles_post_ra>
